<compile_context>
chip_gen: v7x
topology: tpu7x:2x2x1
jax: 0.10.0
libtpu: 0.0.40
codegen_flags: <defaults>
</compile_context>

<pallas_src>
import functools

import jax
import jax.numpy as jnp
from jax.experimental import pallas as pl
from jax.experimental.pallas import tpu as pltpu


NUM_SPLITS = 2                       # leading "parallel" grid axis (megacore); ~free elsewhere
MAX_R_TILE = 65536                   # lane-tile cap
VMEM_BUDGET = 24 * 1024 * 1024       # accounted VMEM for inputs (x2 buffers) + live intermediates


def _cdiv(a, b):
    return (a + b - 1) // b


def _round_up(x, m):
    return ((x + m - 1) // m) * m


def _choose_r_tile(num_rows, num_classes):
    # Per-lane bytes: double-buffered input streams (C + 1 + 4 + 4 rows, counted at 4 B)
    # plus ~8 live (C, T) f32 intermediates of the focal chain (compiler spill space).
    per_lane = 2 * 4 * (num_classes + 9) + 8 * 4 * num_classes
    budget_tile = (VMEM_BUDGET // per_lane) // 128 * 128
    r_tile = max(128, min(MAX_R_TILE, budget_tile))
    # Don't allocate a tile wider than one split's share of the rows.
    share = _round_up(max(1, _cdiv(num_rows, NUM_SPLITS)), 128)
    return max(128, min(r_tile, share))


def _focal_loss_kernel(conf_ref, labels_ref, pred_ref, gt_ref,
                       focal_out, sl1_out, npos_out,
                       *, alpha, gamma, num_rows, r_tile, tiles_per_split):
    r = pl.program_id(1)

    # Output blocks stay resident across the reduction axis: init once per split.
    @pl.when(r == 0)
    def _init():
        focal_out[...] = jnp.zeros_like(focal_out)
        sl1_out[...] = jnp.zeros_like(sl1_out)
        npos_out[...] = jnp.zeros_like(npos_out)

    conf = conf_ref[...].astype(jnp.float32)             # (C, T) logits, lane-dense
    labels = labels_ref[...]                              # (1, T) int32
    C, T = conf.shape

    # FocalSigmoidLossFuncV2.forward with one shared exp / log1p:
    #   e  = exp(-|x|), sp = log1p(e)
    #   log(sigmoid(x))     = min(x, 0) - sp
    #   log(1 - sigmoid(x)) = -max(x, 0) - sp
    #   sigmoid(x)          = s if x >= 0 else e*s,  with s = 1/(1+e)
    abs_c = jnp.abs(conf)
    e = jnp.exp(-abs_c)                                    # EUP
    sp = jnp.log1p(e)                                      # EUP
    log_probs = jnp.minimum(conf, 0.0) - sp
    log_1_probs = -jnp.maximum(conf, 0.0) - sp
    s = 1.0 / (1.0 + e)                                    # exact (keeps torch-close numerics)
    es = e * s                                             # 1 - sigmoid(|x|)
    nonneg = conf >= 0.0
    probs = jnp.where(nonneg, s, es)
    one_m_probs = jnp.where(nonneg, es, s)

    if gamma == 2.0:                                       # static specialisation: plain squares
        probs_g = probs * probs
        probs_1_g = one_m_probs * one_m_probs
    else:
        probs_g = jnp.power(probs, gamma)
        probs_1_g = jnp.power(one_m_probs, gamma)

    # One-hot over foreground classes only (== convert_to_one_hot(labels, C+1)[:, 1:]):
    # background label 0 -> all-false column.  alpha and the minus sign are folded
    # into the two select operands (single select per element).
    cls_id = jax.lax.broadcasted_iota(jnp.int32, (C, T), 0) + 1
    onehot = labels == cls_id
    focal = jnp.where(onehot,
                      (-alpha) * (probs_1_g * log_probs),
                      (alpha - 1.0) * (probs_g * log_1_probs))       # (C, T)

    # Positive anchors + F.smooth_l1_loss(pred[pos], gt[pos], 'sum'), beta = 1.0.
    pos = labels > 0                                       # (1, T)
    posf = pos.astype(jnp.float32)
    d = jnp.abs(pred_ref[...].astype(jnp.float32) - gt_ref[...].astype(jnp.float32))  # (4, T)
    sl1 = jnp.where(d < 1.0, 0.5 * d * d, d - 0.5)
    sl1 = jnp.where(pos, sl1, 0.0)

    # Per-step reduce to three scalars, accumulated in the resident output block.
    def _accumulate(f_part, l_part, n_part):
        focal_out[...] += jnp.sum(f_part)
        sl1_out[...] += jnp.sum(l_part)
        npos_out[...] += jnp.sum(n_part)

    logical_tile = pl.program_id(0) * tiles_per_split + r
    full_tiles = num_rows // r_tile                        # tiles fully inside [0, num_rows)

    @pl.when(logical_tile < full_tiles)
    def _interior():                                       # no tail-masking work here
        _accumulate(focal, sl1, posf)

    @pl.when(logical_tile >= full_tiles)
    def _edge():                                           # ragged tail / phantom tiles
        col = jax.lax.broadcasted_iota(jnp.int32, (1, T), 1) + logical_tile * r_tile
        valid = col < num_rows
        _accumulate(jnp.where(valid, focal, 0.0),
                    jnp.where(valid, sl1, 0.0),
                    jnp.where(valid, posf, 0.0))


def focal_loss_transposed(conf_t, labels_row, pred_t, gt_t, alpha=0.25, gamma=2.0):
    """Lane-dense entry point (skips the host transposes).

    conf_t: (C, R) logits, labels_row: (1, R) int32, pred_t/gt_t: (4, R).
    Inputs may be bf16 (cast to f32 in-kernel); accumulation is f32.
    Returns (regression_loss, classification_loss).
    """
    num_classes, num_rows = conf_t.shape
    r_tile = _choose_r_tile(num_rows, num_classes)
    total_tiles = _cdiv(num_rows, r_tile)
    num_splits = min(NUM_SPLITS, total_tiles)
    tiles_per_split = _cdiv(total_tiles, num_splits)

    # Clamp phantom tiles (the last split may run past total_tiles); their
    # contribution is zeroed by the in-kernel `valid` mask.
    def data_map(p, r):
        return (0, jnp.minimum(p * tiles_per_split + r, total_tiles - 1))

    out_map = lambda p, r: (p, 0, 0)

    kernel = functools.partial(
        _focal_loss_kernel, alpha=alpha, gamma=gamma, num_rows=num_rows,
        r_tile=r_tile, tiles_per_split=tiles_per_split)

    focal_p, sl1_p, npos_p = pl.pallas_call(
        kernel,
        grid=(num_splits, tiles_per_split),
        in_specs=[
            pl.BlockSpec((num_classes, r_tile), data_map),
            pl.BlockSpec((1, r_tile), data_map),
            pl.BlockSpec((4, r_tile), data_map),
            pl.BlockSpec((4, r_tile), data_map),
        ],
        out_specs=[
            pl.BlockSpec((1, 1, 1), out_map),
            pl.BlockSpec((1, 1, 1), out_map),
            pl.BlockSpec((1, 1, 1), out_map),
        ],
        out_shape=[
            jax.ShapeDtypeStruct((num_splits, 1, 1), jnp.float32),  # focal sum (per split)
            jax.ShapeDtypeStruct((num_splits, 1, 1), jnp.float32),  # smooth-L1 sum over positives
            jax.ShapeDtypeStruct((num_splits, 1, 1), jnp.float32),  # num_pos
        ],
        compiler_params=pltpu.CompilerParams(
            dimension_semantics=("parallel", "arbitrary"),
            vmem_limit_bytes=32 * 1024 * 1024,
        ),
    )(conf_t, labels_row, pred_t, gt_t)

    focal_sum = jnp.sum(focal_p)
    sl1_sum = jnp.sum(sl1_p)
    # Guard against a batch with zero positive anchors (the unguarded torch
    # reference produces inf/NaN there; identical whenever num_pos >= 1).
    num_pos = jnp.maximum(jnp.sum(npos_p), 1.0)

    reg_loss = sl1_sum / num_pos
    cls_loss = 5.0 * focal_sum / num_pos
    return reg_loss, cls_loss


def focal_loss(confidence, predicted_locations, labels, gt_locations,
               alpha=0.25, gamma=2.0):
    """Matches FocalLoss.forward(confidence, predicted_locations, labels, gt_locations).

    Returns (regression_loss, classification_loss).  Inputs may be bf16.
    If the caller can produce class-major layouts upstream, use
    focal_loss_transposed() directly and skip the transposes below.
    """
    num_classes = confidence.shape[-1]
    conf_t = confidence.reshape(-1, num_classes).T            # (C, R)
    lab_t = labels.reshape(1, -1).astype(jnp.int32)           # (1, R)
    pred_t = predicted_locations.reshape(-1, 4).T             # (4, R)
    gt_t = gt_locations.reshape(-1, 4).T                      # (4, R)
    return focal_loss_transposed(conf_t, lab_t, pred_t, gt_t, alpha=alpha, gamma=gamma)


if __name__ == "__main__":
    key = jax.random.PRNGKey(0)
    k1, k2, k3, k4 = jax.random.split(key, 4)

    B, N, C = 2, 64, 4  # batch, anchors per image, num_classes
    confidence = jax.random.normal(k1, (B, N, C), dtype=jnp.float32)
    predicted_locations = jax.random.normal(k2, (B, N, 4), dtype=jnp.float32)
    gt_locations = jax.random.normal(k3, (B, N, 4), dtype=jnp.float32)
    labels = jax.random.randint(k4, (B, N), 0, C + 1, dtype=jnp.int32)  # 0 = background

    reg_loss, cls_loss = jax.jit(focal_loss)(confidence, predicted_locations, labels, gt_locations)
    jax.block_until_ready((reg_loss, cls_loss))
    print("KERNEL_OK")
</pallas_src>

<mosaic_0001>
module attributes {stable_mosaic.version = 11 : i64} {
  func.func @_focal_loss_kernel(%arg0: i32, %arg1: i32, %arg2: memref<4x128xf32, #tpu.memory_space<vmem>>, %arg3: memref<1x128xi32, #tpu.memory_space<vmem>>, %arg4: memref<4x128xf32, #tpu.memory_space<vmem>>, %arg5: memref<4x128xf32, #tpu.memory_space<vmem>>, %arg6: memref<1x1x1xf32, #tpu.memory_space<vmem>>, %arg7: memref<1x1x1xf32, #tpu.memory_space<vmem>>, %arg8: memref<1x1x1xf32, #tpu.memory_space<vmem>>) attributes {dimension_semantics = [#tpu.dimension_semantics<parallel>, #tpu.dimension_semantics<arbitrary>], iteration_bounds = array<i64: 1, 1>, scalar_prefetch = 0 : i64, scratch_operands = 0 : i64, tpu.core_type = #tpu.core_type<tc>, window_params = [{transform_indices = @transform_0, window_bounds = array<i64: 4, 128>}, {transform_indices = @transform_1, window_bounds = array<i64: 1, 128>}, {transform_indices = @transform_2, window_bounds = array<i64: 4, 128>}, {transform_indices = @transform_3, window_bounds = array<i64: 4, 128>}, {transform_indices = @transform_4, window_bounds = array<i64: 1, 1, 1>}, {transform_indices = @transform_5, window_bounds = array<i64: 1, 1, 1>}, {transform_indices = @transform_6, window_bounds = array<i64: 1, 1, 1>}]} {
    %c0_i32 = arith.constant 0 : i32
    %0 = arith.cmpi eq, %arg1, %c0_i32 : i32
    %1 = arith.extui %0 : i1 to i32
    %c0_i32_0 = arith.constant 0 : i32
    %2 = arith.cmpi ne, %1, %c0_i32_0 : i32
    scf.if %2 {
      %cst_26 = arith.constant 0.000000e+00 : f32
      %69 = vector.broadcast %cst_26 : f32 to vector<1x1x1xf32>
      %c0_27 = arith.constant 0 : index
      %c0_28 = arith.constant 0 : index
      %c0_29 = arith.constant 0 : index
      %70 = vector.load %arg6[%c0_27, %c0_28, %c0_29] : memref<1x1x1xf32, #tpu.memory_space<vmem>>, vector<1x1x1xf32>
      tpu.vector_store %arg6[%c0_27, %c0_28, %c0_29], %69 {strides = array<i32>} : memref<1x1x1xf32, #tpu.memory_space<vmem>>, vector<1x1x1xf32>,
      %cst_30 = arith.constant 0.000000e+00 : f32
      %71 = vector.broadcast %cst_30 : f32 to vector<1x1x1xf32>
      %c0_31 = arith.constant 0 : index
      %c0_32 = arith.constant 0 : index
      %c0_33 = arith.constant 0 : index
      %72 = vector.load %arg7[%c0_31, %c0_32, %c0_33] : memref<1x1x1xf32, #tpu.memory_space<vmem>>, vector<1x1x1xf32>
      tpu.vector_store %arg7[%c0_31, %c0_32, %c0_33], %71 {strides = array<i32>} : memref<1x1x1xf32, #tpu.memory_space<vmem>>, vector<1x1x1xf32>,
      %cst_34 = arith.constant 0.000000e+00 : f32
      %73 = vector.broadcast %cst_34 : f32 to vector<1x1x1xf32>
      %c0_35 = arith.constant 0 : index
      %c0_36 = arith.constant 0 : index
      %c0_37 = arith.constant 0 : index
      %74 = vector.load %arg8[%c0_35, %c0_36, %c0_37] : memref<1x1x1xf32, #tpu.memory_space<vmem>>, vector<1x1x1xf32>
      tpu.vector_store %arg8[%c0_35, %c0_36, %c0_37], %73 {strides = array<i32>} : memref<1x1x1xf32, #tpu.memory_space<vmem>>, vector<1x1x1xf32>,
    } else {
    }
    %c0 = arith.constant 0 : index
    %c0_1 = arith.constant 0 : index
    %3 = vector.load %arg2[%c0, %c0_1] : memref<4x128xf32, #tpu.memory_space<vmem>>, vector<4x128xf32>
    %c0_2 = arith.constant 0 : index
    %c0_3 = arith.constant 0 : index
    %4 = vector.load %arg3[%c0_2, %c0_3] : memref<1x128xi32, #tpu.memory_space<vmem>>, vector<1x128xi32>
    %5 = math.absf %3 : vector<4x128xf32>
    %cst = arith.constant 0.000000e+00 : f32
    %6 = vector.broadcast %cst : f32 to vector<4x128xf32>
    %7 = arith.subf %6, %5 : vector<4x128xf32>
    %8 = math.exp %7 : vector<4x128xf32>
    %9 = math.log1p %8 : vector<4x128xf32>
    %cst_4 = arith.constant 0.000000e+00 : f32
    %10 = vector.broadcast %cst_4 : f32 to vector<4x128xf32>
    %11 = arith.minimumf %3, %10 : vector<4x128xf32>
    %12 = arith.subf %11, %9 : vector<4x128xf32>
    %cst_5 = arith.constant 0.000000e+00 : f32
    %13 = vector.broadcast %cst_5 : f32 to vector<4x128xf32>
    %14 = arith.maximumf %3, %13 : vector<4x128xf32>
    %cst_6 = arith.constant 0.000000e+00 : f32
    %15 = vector.broadcast %cst_6 : f32 to vector<4x128xf32>
    %16 = arith.subf %15, %14 : vector<4x128xf32>
    %17 = arith.subf %16, %9 : vector<4x128xf32>
    %cst_7 = arith.constant 1.000000e+00 : f32
    %18 = vector.broadcast %cst_7 : f32 to vector<4x128xf32>
    %19 = arith.addf %18, %8 : vector<4x128xf32>
    %cst_8 = arith.constant 1.000000e+00 : f32
    %20 = vector.broadcast %cst_8 : f32 to vector<4x128xf32>
    %21 = arith.divf %20, %19 : vector<4x128xf32>
    %22 = arith.mulf %8, %21 : vector<4x128xf32>
    %cst_9 = arith.constant 0.000000e+00 : f32
    %23 = vector.broadcast %cst_9 : f32 to vector<4x128xf32>
    %24 = arith.cmpf oge, %3, %23 : vector<4x128xf32>
    %25 = arith.select %24, %21, %22 : vector<4x128xi1>, vector<4x128xf32>
    %26 = arith.select %24, %22, %21 : vector<4x128xi1>, vector<4x128xf32>
    %27 = arith.mulf %25, %25 : vector<4x128xf32>
    %28 = arith.mulf %26, %26 : vector<4x128xf32>
    %29 = tpu.iota {dimensions = array<i32: 0>} : vector<4x128xi32>
    %c1_i32 = arith.constant 1 : i32
    %30 = vector.broadcast %c1_i32 : i32 to vector<4x128xi32>
    %31 = arith.addi %29, %30 : vector<4x128xi32>
    %32 = vector.broadcast %4 : vector<1x128xi32> to vector<4x128xi32>
    %33 = arith.cmpi eq, %32, %31 : vector<4x128xi32>
    %34 = arith.mulf %28, %12 : vector<4x128xf32>
    %cst_10 = arith.constant -2.500000e-01 : f32
    %35 = vector.broadcast %cst_10 : f32 to vector<4x128xf32>
    %36 = arith.mulf %35, %34 : vector<4x128xf32>
    %37 = arith.mulf %27, %17 : vector<4x128xf32>
    %cst_11 = arith.constant -7.500000e-01 : f32
    %38 = vector.broadcast %cst_11 : f32 to vector<4x128xf32>
    %39 = arith.mulf %38, %37 : vector<4x128xf32>
    %40 = arith.select %33, %36, %39 : vector<4x128xi1>, vector<4x128xf32>
    %c0_i32_12 = arith.constant 0 : i32
    %41 = vector.broadcast %c0_i32_12 : i32 to vector<1x128xi32>
    %42 = arith.cmpi sgt, %4, %41 : vector<1x128xi32>
    %43 = arith.extui %42 : vector<1x128xi1> to vector<1x128xi32>
    %44 = arith.sitofp %43 : vector<1x128xi32> to vector<1x128xf32>
    %c0_13 = arith.constant 0 : index
    %c0_14 = arith.constant 0 : index
    %45 = vector.load %arg4[%c0_13, %c0_14] : memref<4x128xf32, #tpu.memory_space<vmem>>, vector<4x128xf32>
    %c0_15 = arith.constant 0 : index
    %c0_16 = arith.constant 0 : index
    %46 = vector.load %arg5[%c0_15, %c0_16] : memref<4x128xf32, #tpu.memory_space<vmem>>, vector<4x128xf32>
    %47 = arith.subf %45, %46 : vector<4x128xf32>
    %48 = math.absf %47 : vector<4x128xf32>
    %cst_17 = arith.constant 1.000000e+00 : f32
    %49 = vector.broadcast %cst_17 : f32 to vector<4x128xf32>
    %50 = arith.cmpf olt, %48, %49 : vector<4x128xf32>
    %cst_18 = arith.constant 5.000000e-01 : f32
    %51 = vector.broadcast %cst_18 : f32 to vector<4x128xf32>
    %52 = arith.mulf %51, %48 : vector<4x128xf32>
    %53 = arith.mulf %52, %48 : vector<4x128xf32>
    %cst_19 = arith.constant 5.000000e-01 : f32
    %54 = vector.broadcast %cst_19 : f32 to vector<4x128xf32>
    %55 = arith.subf %48, %54 : vector<4x128xf32>
    %56 = arith.select %50, %53, %55 : vector<4x128xi1>, vector<4x128xf32>
    %cst_20 = arith.constant 0.000000e+00 : f32
    %57 = vector.shape_cast %42 : vector<1x128xi1> to vector<1x128xi1>
    %58 = vector.broadcast %57 : vector<1x128xi1> to vector<4x128xi1>
    %59 = vector.broadcast %cst_20 : f32 to vector<4x128xf32>
    %60 = arith.select %58, %56, %59 : vector<4x128xi1>, vector<4x128xf32>
    %c1_i32_21 = arith.constant 1 : i32
    %61 = arith.muli %arg0, %c1_i32_21 : i32
    %62 = arith.addi %61, %arg1 : i32
    %c1_i32_22 = arith.constant 1 : i32
    %63 = arith.cmpi slt, %62, %c1_i32_22 : i32
    %64 = arith.extui %63 : i1 to i32
    %c0_i32_23 = arith.constant 0 : i32
    %65 = arith.cmpi ne, %64, %c0_i32_23 : i32
    scf.if %65 {
      %c0_26 = arith.constant 0 : index
      %c0_27 = arith.constant 0 : index
      %c0_28 = arith.constant 0 : index
      %69 = vector.load %arg6[%c0_26, %c0_27, %c0_28] : memref<1x1x1xf32, #tpu.memory_space<vmem>>, vector<1x1x1xf32>
      %70 = vector.shape_cast %40 : vector<4x128xf32> to vector<1x4x128xf32>
      %cst_29 = arith.constant dense<0.000000e+00> : vector<1xf32>
      %71 = vector.multi_reduction <add>, %70, %cst_29 [1, 2] : vector<1x4x128xf32> to vector<1xf32>
      %72 = vector.shape_cast %71 : vector<1xf32> to vector<1x1x1xf32>
      %73 = vector.extract %72[0, 0, 0] : f32 from vector<1x1x1xf32>
      %74 = vector.broadcast %73 : f32 to vector<1x1x1xf32>
      %75 = arith.addf %69, %74 : vector<1x1x1xf32>
      %c0_30 = arith.constant 0 : index
      %c0_31 = arith.constant 0 : index
      %c0_32 = arith.constant 0 : index
      %76 = vector.load %arg6[%c0_30, %c0_31, %c0_32] : memref<1x1x1xf32, #tpu.memory_space<vmem>>, vector<1x1x1xf32>
      tpu.vector_store %arg6[%c0_30, %c0_31, %c0_32], %75 {strides = array<i32>} : memref<1x1x1xf32, #tpu.memory_space<vmem>>, vector<1x1x1xf32>,
      %c0_33 = arith.constant 0 : index
      %c0_34 = arith.constant 0 : index
      %c0_35 = arith.constant 0 : index
      %77 = vector.load %arg7[%c0_33, %c0_34, %c0_35] : memref<1x1x1xf32, #tpu.memory_space<vmem>>, vector<1x1x1xf32>
      %78 = vector.shape_cast %60 : vector<4x128xf32> to vector<1x4x128xf32>
      %cst_36 = arith.constant dense<0.000000e+00> : vector<1xf32>
      %79 = vector.multi_reduction <add>, %78, %cst_36 [1, 2] : vector<1x4x128xf32> to vector<1xf32>
      %80 = vector.shape_cast %79 : vector<1xf32> to vector<1x1x1xf32>
      %81 = vector.extract %80[0, 0, 0] : f32 from vector<1x1x1xf32>
      %82 = vector.broadcast %81 : f32 to vector<1x1x1xf32>
      %83 = arith.addf %77, %82 : vector<1x1x1xf32>
      %c0_37 = arith.constant 0 : index
      %c0_38 = arith.constant 0 : index
      %c0_39 = arith.constant 0 : index
      %84 = vector.load %arg7[%c0_37, %c0_38, %c0_39] : memref<1x1x1xf32, #tpu.memory_space<vmem>>, vector<1x1x1xf32>
      tpu.vector_store %arg7[%c0_37, %c0_38, %c0_39], %83 {strides = array<i32>} : memref<1x1x1xf32, #tpu.memory_space<vmem>>, vector<1x1x1xf32>,
      %c0_40 = arith.constant 0 : index
      %c0_41 = arith.constant 0 : index
      %c0_42 = arith.constant 0 : index
      %85 = vector.load %arg8[%c0_40, %c0_41, %c0_42] : memref<1x1x1xf32, #tpu.memory_space<vmem>>, vector<1x1x1xf32>
      %86 = vector.shape_cast %44 : vector<1x128xf32> to vector<1x1x128xf32>
      %cst_43 = arith.constant dense<0.000000e+00> : vector<1xf32>
      %87 = vector.multi_reduction <add>, %86, %cst_43 [1, 2] : vector<1x1x128xf32> to vector<1xf32>
      %88 = vector.shape_cast %87 : vector<1xf32> to vector<1x1x1xf32>
      %89 = vector.extract %88[0, 0, 0] : f32 from vector<1x1x1xf32>
      %90 = vector.broadcast %89 : f32 to vector<1x1x1xf32>
      %91 = arith.addf %85, %90 : vector<1x1x1xf32>
      %c0_44 = arith.constant 0 : index
      %c0_45 = arith.constant 0 : index
      %c0_46 = arith.constant 0 : index
      %92 = vector.load %arg8[%c0_44, %c0_45, %c0_46] : memref<1x1x1xf32, #tpu.memory_space<vmem>>, vector<1x1x1xf32>
      tpu.vector_store %arg8[%c0_44, %c0_45, %c0_46], %91 {strides = array<i32>} : memref<1x1x1xf32, #tpu.memory_space<vmem>>, vector<1x1x1xf32>,
    } else {
    }
    %c1_i32_24 = arith.constant 1 : i32
    %66 = arith.cmpi sge, %62, %c1_i32_24 : i32
    %67 = arith.extui %66 : i1 to i32
    %c0_i32_25 = arith.constant 0 : i32
    %68 = arith.cmpi ne, %67, %c0_i32_25 : i32
    scf.if %68 {
      %69 = tpu.iota {dimensions = array<i32: 1>} : vector<1x128xi32>
      %c128_i32 = arith.constant 128 : i32
      %70 = arith.muli %62, %c128_i32 : i32
      %71 = vector.broadcast %70 : i32 to vector<1x128xi32>
      %72 = arith.addi %69, %71 : vector<1x128xi32>
      %c128_i32_26 = arith.constant 128 : i32
      %73 = vector.broadcast %c128_i32_26 : i32 to vector<1x128xi32>
      %74 = arith.cmpi slt, %72, %73 : vector<1x128xi32>
      %cst_27 = arith.constant 0.000000e+00 : f32
      %75 = vector.shape_cast %74 : vector<1x128xi1> to vector<1x128xi1>
      %76 = vector.broadcast %75 : vector<1x128xi1> to vector<4x128xi1>
      %77 = vector.broadcast %cst_27 : f32 to vector<4x128xf32>
      %78 = arith.select %76, %40, %77 : vector<4x128xi1>, vector<4x128xf32>
      %cst_28 = arith.constant 0.000000e+00 : f32
      %79 = vector.shape_cast %74 : vector<1x128xi1> to vector<1x128xi1>
      %80 = vector.broadcast %79 : vector<1x128xi1> to vector<4x128xi1>
      %81 = vector.broadcast %cst_28 : f32 to vector<4x128xf32>
      %82 = arith.select %80, %60, %81 : vector<4x128xi1>, vector<4x128xf32>
      %cst_29 = arith.constant 0.000000e+00 : f32
      %83 = vector.broadcast %cst_29 : f32 to vector<1x128xf32>
      %84 = arith.select %74, %44, %83 : vector<1x128xi1>, vector<1x128xf32>
      %c0_30 = arith.constant 0 : index
      %c0_31 = arith.constant 0 : index
      %c0_32 = arith.constant 0 : index
      %85 = vector.load %arg6[%c0_30, %c0_31, %c0_32] : memref<1x1x1xf32, #tpu.memory_space<vmem>>, vector<1x1x1xf32>
      %86 = vector.shape_cast %78 : vector<4x128xf32> to vector<1x4x128xf32>
      %cst_33 = arith.constant dense<0.000000e+00> : vector<1xf32>
      %87 = vector.multi_reduction <add>, %86, %cst_33 [1, 2] : vector<1x4x128xf32> to vector<1xf32>
      %88 = vector.shape_cast %87 : vector<1xf32> to vector<1x1x1xf32>
      %89 = vector.extract %88[0, 0, 0] : f32 from vector<1x1x1xf32>
      %90 = vector.broadcast %89 : f32 to vector<1x1x1xf32>
      %91 = arith.addf %85, %90 : vector<1x1x1xf32>
      %c0_34 = arith.constant 0 : index
      %c0_35 = arith.constant 0 : index
      %c0_36 = arith.constant 0 : index
      %92 = vector.load %arg6[%c0_34, %c0_35, %c0_36] : memref<1x1x1xf32, #tpu.memory_space<vmem>>, vector<1x1x1xf32>
      tpu.vector_store %arg6[%c0_34, %c0_35, %c0_36], %91 {strides = array<i32>} : memref<1x1x1xf32, #tpu.memory_space<vmem>>, vector<1x1x1xf32>,
      %c0_37 = arith.constant 0 : index
      %c0_38 = arith.constant 0 : index
      %c0_39 = arith.constant 0 : index
      %93 = vector.load %arg7[%c0_37, %c0_38, %c0_39] : memref<1x1x1xf32, #tpu.memory_space<vmem>>, vector<1x1x1xf32>
      %94 = vector.shape_cast %82 : vector<4x128xf32> to vector<1x4x128xf32>
      %cst_40 = arith.constant dense<0.000000e+00> : vector<1xf32>
      %95 = vector.multi_reduction <add>, %94, %cst_40 [1, 2] : vector<1x4x128xf32> to vector<1xf32>
      %96 = vector.shape_cast %95 : vector<1xf32> to vector<1x1x1xf32>
      %97 = vector.extract %96[0, 0, 0] : f32 from vector<1x1x1xf32>
      %98 = vector.broadcast %97 : f32 to vector<1x1x1xf32>
      %99 = arith.addf %93, %98 : vector<1x1x1xf32>
      %c0_41 = arith.constant 0 : index
      %c0_42 = arith.constant 0 : index
      %c0_43 = arith.constant 0 : index
      %100 = vector.load %arg7[%c0_41, %c0_42, %c0_43] : memref<1x1x1xf32, #tpu.memory_space<vmem>>, vector<1x1x1xf32>
      tpu.vector_store %arg7[%c0_41, %c0_42, %c0_43], %99 {strides = array<i32>} : memref<1x1x1xf32, #tpu.memory_space<vmem>>, vector<1x1x1xf32>,
      %c0_44 = arith.constant 0 : index
      %c0_45 = arith.constant 0 : index
      %c0_46 = arith.constant 0 : index
      %101 = vector.load %arg8[%c0_44, %c0_45, %c0_46] : memref<1x1x1xf32, #tpu.memory_space<vmem>>, vector<1x1x1xf32>
      %102 = vector.shape_cast %84 : vector<1x128xf32> to vector<1x1x128xf32>
      %cst_47 = arith.constant dense<0.000000e+00> : vector<1xf32>
      %103 = vector.multi_reduction <add>, %102, %cst_47 [1, 2] : vector<1x1x128xf32> to vector<1xf32>
      %104 = vector.shape_cast %103 : vector<1xf32> to vector<1x1x1xf32>
      %105 = vector.extract %104[0, 0, 0] : f32 from vector<1x1x1xf32>
      %106 = vector.broadcast %105 : f32 to vector<1x1x1xf32>
      %107 = arith.addf %101, %106 : vector<1x1x1xf32>
      %c0_48 = arith.constant 0 : index
      %c0_49 = arith.constant 0 : index
      %c0_50 = arith.constant 0 : index
      %108 = vector.load %arg8[%c0_48, %c0_49, %c0_50] : memref<1x1x1xf32, #tpu.memory_space<vmem>>, vector<1x1x1xf32>
      tpu.vector_store %arg8[%c0_48, %c0_49, %c0_50], %107 {strides = array<i32>} : memref<1x1x1xf32, #tpu.memory_space<vmem>>, vector<1x1x1xf32>,
    } else {
    }
    return
  }
  func.func @transform_0(%arg0: i32, %arg1: i32) -> (i32, i32) {
    %c1_i32 = arith.constant 1 : i32
    %0 = arith.muli %arg0, %c1_i32 : i32
    %1 = arith.addi %0, %arg1 : i32
    %c0_i32 = arith.constant 0 : i32
    %2 = arith.minsi %1, %c0_i32 : i32
    %c0_i32_0 = arith.constant 0 : i32
    %c0_i32_1 = arith.constant 0 : i32
    return %c0_i32_0, %2 : i32, i32
  }
  func.func @transform_1(%arg0: i32, %arg1: i32) -> (i32, i32) {
    %c1_i32 = arith.constant 1 : i32
    %0 = arith.muli %arg0, %c1_i32 : i32
    %1 = arith.addi %0, %arg1 : i32
    %c0_i32 = arith.constant 0 : i32
    %2 = arith.minsi %1, %c0_i32 : i32
    %c0_i32_0 = arith.constant 0 : i32
    %c0_i32_1 = arith.constant 0 : i32
    return %c0_i32_0, %2 : i32, i32
  }
  func.func @transform_2(%arg0: i32, %arg1: i32) -> (i32, i32) {
    %c1_i32 = arith.constant 1 : i32
    %0 = arith.muli %arg0, %c1_i32 : i32
    %1 = arith.addi %0, %arg1 : i32
    %c0_i32 = arith.constant 0 : i32
    %2 = arith.minsi %1, %c0_i32 : i32
    %c0_i32_0 = arith.constant 0 : i32
    %c0_i32_1 = arith.constant 0 : i32
    return %c0_i32_0, %2 : i32, i32
  }
  func.func @transform_3(%arg0: i32, %arg1: i32) -> (i32, i32) {
    %c1_i32 = arith.constant 1 : i32
    %0 = arith.muli %arg0, %c1_i32 : i32
    %1 = arith.addi %0, %arg1 : i32
    %c0_i32 = arith.constant 0 : i32
    %2 = arith.minsi %1, %c0_i32 : i32
    %c0_i32_0 = arith.constant 0 : i32
    %c0_i32_1 = arith.constant 0 : i32
    return %c0_i32_0, %2 : i32, i32
  }
  func.func @transform_4(%arg0: i32, %arg1: i32) -> (i32, i32, i32) {
    %c0_i32 = arith.constant 0 : i32
    %c0_i32_0 = arith.constant 0 : i32
    %c0_i32_1 = arith.constant 0 : i32
    return %arg0, %c0_i32, %c0_i32_0 : i32, i32, i32
  }
  func.func @transform_5(%arg0: i32, %arg1: i32) -> (i32, i32, i32) {
    %c0_i32 = arith.constant 0 : i32
    %c0_i32_0 = arith.constant 0 : i32
    %c0_i32_1 = arith.constant 0 : i32
    return %arg0, %c0_i32, %c0_i32_0 : i32, i32, i32
  }
  func.func @transform_6(%arg0: i32, %arg1: i32) -> (i32, i32, i32) {
    %c0_i32 = arith.constant 0 : i32
    %c0_i32_0 = arith.constant 0 : i32
    %c0_i32_1 = arith.constant 0 : i32
    return %arg0, %c0_i32, %c0_i32_0 : i32, i32, i32
  }
}

</mosaic_0001>

<bundles_post_ra>
// kernel: focal_loss.1
= control target key start
LH: loop header
LB: loop body
LE: loop exit
PB: predicated region body
PF: predicated region fallthrough
CT: control target
= control target key end

     0   :  { %12 = vsyncpa [#allocation3], 0  ;;  %vm231_vm0 = vcmask 1040384   ;;  %vm131_vm2 = vcmask 0   ;;  %v456_v2 = vmov 0.0   ;;  %s568_s0 = inlined_call_operand.vmem [shape: f32[4,128], index: 0, kind: input, shape index: {}]   ;;  %s569_s1 = inlined_call_operand.vmem [shape: s32[1,128], index: 1, kind: input, shape index: {}]   ;;  %s570_s2 = inlined_call_operand.vmem [shape: f32[4,128], index: 2, kind: input, shape index: {}]   ;;  %s571_s3 = inlined_call_operand.vmem [shape: f32[4,128], index: 3, kind: input, shape index: {}]   ;;  %s572_s4 = inlined_call_operand.hbm [shape: f32[1,1,1], index: 4, kind: output, shape index: {0}]   ;;  %s573_s5 = inlined_call_operand.hbm [shape: f32[1,1,1], index: 5, kind: output, shape index: {1}]   ;;  %s574_s6 = inlined_call_operand.hbm [shape: f32[1,1,1], index: 6, kind: output, shape index: {2}]  }
   0x1   :  { %v136_v0 = vld [vmem:[%s569_s1] sm:$0x1]  ;;  %133 = vst.msk [vmem:[#allocation4] sm:$0x1] %vm131_vm2, %v456_v2  ;;  %134 = vst.msk [vmem:[#allocation6] sm:$0x1] %vm131_vm2, %v456_v2 }
   0x2   :  { %vm177_vm1 = vcmp.gt.s32.totalorder %v136_v0, 0  ;;  %v135_v1 = vld [vmem:[%s568_s0] sm:$0xf]  ;;  %132 = vst.msk [vmem:[#allocation2] sm:$0x1] %vm131_vm2, %v456_v2 }
   0x3   :  { %v367_v3 = vsel %vm177_vm1, 1.0, %v456_v2  ;;  %v137_v4 = vand.u32 2147483647, %v135_v1 }
   0x4   :  { %v232_v5 = vsel %vm231_vm0, %v367_v3, 0.0 }
   0x5   :  { %233 = vadd.xlane.f32.xlu1 %v232_v5  ;;  %v138_v6 = vsub.f32 0.0, %v137_v4 }
   0x6   :  { %13 = vsyncpa [#allocation5], 0  ;;  %v180_v10 = vld [vmem:[%s570_s2] sm:$0xf]  ;;  %v164_v12 = vlaneseq  ;;  %v152_v19 = vmax.f32 %v135_v1, 0.0  ;;  %v457_v24 = vmov 0  }
   0x7   :  { %v139_v7 = vmul.f32 1.442695, %v138_v6  ;;  %v181_v11 = vld [vmem:[%s571_s3] sm:$0xf]  ;;  %v178_v25 = vsel %vm177_vm1, 1, %v457_v24  ;;  %v150_v26 = vmin.f32 %v135_v1, 0.0 }
   0x8   :  { %v182_v14 = vsub.f32 %v180_v10, %v181_v11  ;;  %v165_v15 = vshrl.u32 %v164_v12, 7  ;;  %v153_v27 = vsub.f32 0.0, %v152_v19  ;;  %vm159_vm4 = vcmp.ge.f32.partialorder %v135_v1, 0.0  ;;  %s458_s3 = smov [#allocation2]   ;;  %s459_s28 = smov [#allocation4]  }
   0x9   :  { %380 = vpow2.f32 %v139_v7  ;;  %vm201_vm8 = vcmask 1043456   ;;  %s311_s27 = sshll.u32 %s458_s3, 4  ;;  %s321_s29 = sshll.u32 %s459_s28, 4  ;;  %v216_v12 = vld [vmem:[#allocation4] sm:$0x1]  ;;  %s312_s27 = int_to_ptr.vmem [resolvable:$true] %s311_s27  ;;  %s514_s29 = int_to_ptr.vmem [resolvable:$true] %s321_s29 }
   0xa   :  { %v183_v17 = vand.u32 2147483647, %v182_v14  ;;  %v169_v20 = vsub.s32 0, %v165_v15  ;;  %v166_v32 = vadd.s32 1, %v165_v15  ;;  %s460_s7 = smov [#allocation6]   ;;  %s386_s10 = scalar_lea.vmem %s312_s27, 16 }
   0xb   :  { %s331_s8 = sshll.u32 %s460_s7, 4  ;;  %p387_p0 = scmp.ne.s32.totalorder %s312_s27, %s386_s10  ;;  %s528_s8 = int_to_ptr.vmem [resolvable:$true] %s331_s8 }
   0xc   :  { %v185_v22 = vmul.f32 0.5, %v183_v17  ;;  %v170_v30 = vrot.slane %v136_v0, %v169_v20  ;;  %v368_v35 = vadd.f32 -0.5, %v183_v17  ;;  %v192_v36 = vrot.slane %v178_v25, %v169_v20  ;;  %s390_s11 = scalar_lea.vmem %s312_s27, 32  ;;  %p391_p1 = scmp.lt.s32.totalorder %s312_s27, %s312_s27 }
   0xd   :  { %vm184_vm5 = vcmp.lt.f32.partialorder %v183_v17, 1.0  ;;  %p392_p2 = scmp.lt.s32.totalorder %s390_s11, %s386_s10 }
   0xe   :  { %v186_v34 = vmul.f32 %v185_v22, %v183_v17  ;;  %vm171_vm6 = vcmp.eq.s32.totalorder %v170_v30, %v166_v32  ;;  %vm193_vm7 = vcmp.eq.s32.totalorder %v192_v36, 1 }
   0xf   :  { %p393_p3 = por %p392_p2, %p391_p1 }
  0x10   :  { %v188_v45 = vsel %vm184_vm5, %v186_v34, %v368_v35 }
  0x11   :  { %v194_v49 = vsel %vm193_vm7, %v188_v45, 0.0  ;;  %p394_p4 = pnand %p393_p3, %p387_p0 }
  0x12   :  { %v217_v51 = vsel %vm201_vm8, %v194_v49, 0.0 }
  0x13   :  { %v381_v8 = vpop.eup %380 }
  0x14   :  { %v141_v9 = vadd.f32 1.0, %v381_v8  ;;  %v144_v13 = vmul.f32 -0.5, %v381_v8  ;;  %v147_v18 = vand.u32 2147483647, %v381_v8 }
  0x16   :  { %382 = vlog2.f32 %v141_v9  ;;  %v145_v16 = vadd.f32 1.0, %v144_v13  ;;  %vm148_vm3 = vcmp.lt.f32.partialorder %v147_v18, 0.0004427343  ;;  %v230_v13 = vld [vmem:[#allocation6] sm:$0x1] }
  0x17   :  { %384 = vrcp.f32 %v141_v9  ;;  %v200_v9 = vld [vmem:[#allocation2] sm:$0x1] }
  0x18   :  { %v146_v21 = vmul.f32 %v381_v8, %v145_v16 }
  0x20   :  { %v383_v23 = vpop.eup %382 }
  0x21   :  { %v385_v28 = vpop.eup %384  ;;  %v143_v29 = vmul.f32 0.6931472, %v383_v23 }
  0x22   :  { %v158_v31 = vmul.f32 %v385_v28, %v381_v8 }
  0x23   :  { %v149_v33 = vsel %vm148_vm3, %v146_v21, %v143_v29 }
  0x24   :  { %v151_v37 = vsub.f32 %v150_v26, %v149_v33  ;;  %v154_v38 = vsub.f32 %v153_v27, %v149_v33  ;;  %v160_v39 = vsel %vm159_vm4, %v385_v28, %v158_v31  ;;  %v161_v40 = vsel %vm159_vm4, %v158_v31, %v385_v28 }
  0x25   :  { %v162_v41 = vmul.f32 %v160_v39, %v160_v39  ;;  %v163_v42 = vmul.f32 %v161_v40, %v161_v40 }
  0x27   :  { %v172_v43 = vmul.f32 %v163_v42, %v151_v37  ;;  %v174_v44 = vmul.f32 %v162_v41, %v154_v38 }
  0x29   :  { %v173_v46 = vmul.f32 -0.25, %v172_v43  ;;  %v175_v47 = vmul.f32 -0.75, %v174_v44 }
  0x2b   :  { %v176_v48 = vsel %vm171_vm6, %v173_v46, %v175_v47 }
  0x2c   :  { %v202_v50 = vsel %vm201_vm8, %v176_v48, 0.0 }
  0x2d   :  { %203 = vadd.xlane.f32.xlu0 %v202_v50 }
  0x31   :  { %218 = vadd.xlane.f32.xlu0 %v217_v51 }
  0x92   :  { %v234_v52 = vpop.xlane.xlu1 %233 }
  0x93   :  { %v235_v53 = vrot.slane %v234_v52, 4 }
  0x95   :  { %v236_v54 = vadd.f32 %v235_v53, %v234_v52 }
  0x97   :  { %v237_v58 = vrot.slane %v236_v54, 2 }
  0x99   :  { %v238_v0 = vadd.f32 %v237_v58, %v236_v54 }
  0x9b   :  { %v239_v5 = vrot.slane %v238_v0, 1 }
  0x9d   :  { %v240_v8 = vadd.f32 %v239_v5, %v238_v0 }
  0xba   :  { %v204_v55 = vpop.xlane.xlu0 %203 }
  0xbb   :  { %v205_v56 = vrot.slane %v204_v55, 4 }
  0xbd   :  { %v206_v57 = vadd.f32 %v205_v56, %v204_v55 }
  0xbe   :  { %v219_v59 = vpop.xlane.xlu0 %218 }
  0xbf   :  { %v207_v60 = vrot.slane %v206_v57, 2  ;;  %v220_v61 = vrot.slane %v219_v59, 4 }
  0xc1   :  { %v221_v62 = vadd.f32 %v220_v61, %v219_v59  ;;  %v208_v63 = vadd.f32 %v207_v60, %v206_v57 }
  0xc3   :  { %v222_v1 = vrot.slane %v221_v62, 2  ;;  %v209_v2 = vrot.slane %v208_v63, 1 }
  0xc5   :  { %v223_v3 = vadd.f32 %v222_v1, %v221_v62  ;;  %v210_v4 = vadd.f32 %v209_v2, %v208_v63 }
  0xc7   :  { %369 = vpush %v210_v4  ;;  %v224_v6 = vrot.slane %v223_v3, 1 }
  0xc9   :  { %v225_v7 = vadd.f32 %v224_v6, %v223_v3 }
  0xcb   :  { %371 = vpush %v225_v7 }
  0xcc   :  { %373 = vpush %v240_v8 }
  0xf8   :  { %s370_s2 = spop %369 }
  0xf9   :  { %v212_v10 = vstv %s370_s2 }
  0xfa   :  { %v213_v11 = vadd.f32 %v212_v10, %v200_v9 }
  0xfc   :  { %215 = vst.msk [vmem:[#allocation2] sm:$0x1] %vm131_vm2, %v213_v11  ;;  %s372_s30 = spop %371 }
  0xfd   :  { %v227_v14 = vstv %s372_s30  ;;  %s374_s9 = spop %373 }
  0xfe   :  { %v228_v15 = vadd.f32 %v227_v14, %v216_v12  ;;  %v242_v16 = vstv %s374_s9 }
  0xff   :  { %397 = shalt.err (!%p394_p4)
}
 0x100   :  { %s398_s14 = scalar_lea.hbm %s572_s4, 16 }
 0x101   :  { %p399_p5 = scmp.ne.s32.totalorder %s572_s4, %s398_s14  ;;  %p402_p6 = scmp.lt.u32.totalorder %s398_s14, %s572_s4 }
 0x103   :  { %p404_p7 = pnand %p402_p6, %p399_p5 }
 0x105   :  { %407 = shalt.err (!%p404_p7)
}
 0x106   :  { %314 = dma.vmem_to_hbm [thread:$0]  %s312_s27, 16, %s572_s4, [#allocation3]   ;;  %v243_v17 = vadd.f32 %v242_v16, %v230_v13  ;;  %229 = vst.msk [vmem:[#allocation4] sm:$0x1] %vm131_vm2, %v228_v15 }
 0x107   :  { %s408_s21 = scalar_lea.vmem %s514_s29, 16  ;;  %s412_s22 = scalar_lea.vmem %s514_s29, 32 }
 0x108   :  { %244 = vst.msk [vmem:[#allocation6] sm:$0x1] %vm131_vm2, %v243_v17  ;;  %p409_p8 = scmp.ne.s32.totalorder %s514_s29, %s408_s21  ;;  %p413_p9 = scmp.lt.s32.totalorder %s514_s29, %s514_s29 }
 0x109   :  { %p414_p10 = scmp.lt.s32.totalorder %s412_s22, %s408_s21 }
 0x10b   :  { %p415_p11 = por %p414_p10, %p413_p9 }
 0x10d   :  { %p416_p12 = pnand %p415_p11, %p409_p8 }
 0x10f   :  { %419 = shalt.err (!%p416_p12)
}
 0x110   :  { %s420_s4 = scalar_lea.hbm %s573_s5, 16 }
 0x111   :  { %p421_p13 = scmp.ne.s32.totalorder %s573_s5, %s420_s4  ;;  %p424_p0 = scmp.lt.u32.totalorder %s420_s4, %s573_s5 }
 0x113   :  { %p426_p1 = pnand %p424_p0, %p421_p13 }
 0x115   :  { %429 = shalt.err (!%p426_p1)
}
 0x116   :  { %324 = dma.vmem_to_hbm [thread:$0]  %s514_s29, 16, %s573_s5, [#allocation5]  }
 0x117   :  { %s430_s27 = scalar_lea.vmem %s528_s8, 16  ;;  %s434_s28 = scalar_lea.vmem %s528_s8, 32 }
 0x118   :  { %p431_p2 = scmp.ne.s32.totalorder %s528_s8, %s430_s27  ;;  %p435_p3 = scmp.lt.s32.totalorder %s528_s8, %s528_s8 }
 0x119   :  { %p436_p4 = scmp.lt.s32.totalorder %s434_s28, %s430_s27 }
 0x11b   :  { %p437_p5 = por %p436_p4, %p435_p3 }
 0x11d   :  { %p438_p6 = pnand %p437_p5, %p431_p2 }
 0x11f   :  { %441 = shalt.err (!%p438_p6)
}
 0x120   :  { %s442_s9 = scalar_lea.hbm %s574_s6, 16 }
 0x121   :  { %p443_p7 = scmp.ne.s32.totalorder %s574_s6, %s442_s9  ;;  %p446_p8 = scmp.lt.u32.totalorder %s442_s9, %s574_s6 }
 0x123   :  { %p448_p9 = pnand %p446_p8, %p443_p7 }
 0x125   :  { %451 = shalt.err (!%p448_p9)
}
 0x126   :  { %334 = dma.vmem_to_hbm [thread:$0]  %s528_s8, 16, %s574_s6, [#allocation5]  }
 0x127   :  { %452 = dma.done.wait [#allocation3], 16  }
 0x128   :  { %453 = vsyncadd [#allocation3], 4294967280 }
 0x129   :  { %454 = dma.done.wait [#allocation5], 32  }
 0x12a   :  { %455 = vsyncadd [#allocation5], 4294967264 }
 0x12b   :  { %344 = vsyncpa [#allocation3], 1 }
 0x12c   :  { %345 = vsyncpa [#allocation5], 1 }

</bundles_post_ra>
